<compile_context>
chip_gen: v7x
topology: tpu7x:2x2x1
jax: 0.10.0
libtpu: 0.0.40
codegen_flags: <defaults>
</compile_context>

<pallas_src>
import math
import functools

import jax
import jax.numpy as jnp
from jax.experimental import pallas as pl
from jax.experimental.pallas import tpu as pltpu


PARAM_DTYPE = jnp.bfloat16   # weight matrices / embeddings
ACT_DTYPE = jnp.bfloat16     # activations between kernels


# ----------------------------------------------------------------------------
# small helpers
# ----------------------------------------------------------------------------

def _round_up(x, m):
    return (x + m - 1) // m * m


def _pick_tile(dim, target, align):
    """Largest tile <= target (multiple of `align`) that divides the padded dim."""
    dim_p = _round_up(dim, align)
    if dim_p <= target:
        return dim_p
    t = (target // align) * align
    while dim_p % t != 0:
        t -= align
    return t


def _pad2(a, rows, cols):
    r, c = a.shape
    if r == rows and c == cols:
        return a
    return jnp.pad(a, ((0, rows - r), (0, cols - c)))


# ----------------------------------------------------------------------------
# Pallas kernels
# ----------------------------------------------------------------------------

def _layernorm_kernel(x_ref, g_ref, b_ref, o_ref):
    # x: (tm, C)   g, b: (1, C) fp32
    x = x_ref[...].astype(jnp.float32)
    mean = jnp.mean(x, axis=-1, keepdims=True)
    var = jnp.mean(jnp.square(x - mean), axis=-1, keepdims=True)
    xhat = (x - mean) * jax.lax.rsqrt(var + 1e-5)
    o_ref[...] = (xhat * g_ref[...] + b_ref[...]).astype(o_ref.dtype)


def _linear_kernel(x_ref, w_ref, *rest, nk, activation, has_bias, has_residual,
                   transpose_w):
    # x: (tm, tk) bf16 ; w: (tk, tn) or (tn, tk) bf16 ; acc: (tm, tn) fp32 scratch
    refs = list(rest)
    b_ref = refs.pop(0) if has_bias else None
    r_ref = refs.pop(0) if has_residual else None
    o_ref, acc_ref = refs

    @pl.when(pl.program_id(2) == 0)
    def _():
        acc_ref[...] = jnp.zeros_like(acc_ref)

    x = x_ref[...]
    w = w_ref[...]
    if transpose_w:
        acc_ref[...] += jax.lax.dot_general(
            x, w, (((1,), (1,)), ((), ())), preferred_element_type=jnp.float32)
    else:
        acc_ref[...] += jnp.dot(x, w, preferred_element_type=jnp.float32)

    @pl.when(pl.program_id(2) == nk - 1)
    def _():
        y = acc_ref[...]
        if has_bias:
            y = y + b_ref[...].astype(jnp.float32)
        if activation == "gelu_tanh":
            c = math.sqrt(2.0 / math.pi)
            y = 0.5 * y * (1.0 + jnp.tanh(c * (y + 0.044715 * y * y * y)))
        if has_residual:
            y = y + r_ref[...].astype(jnp.float32)
        o_ref[...] = y.astype(o_ref.dtype)


def _attention_kernel(q_ref, kv_ref, o_ref, *, n_head, head_dim, scale):
    # q_ref : (1, tq, 3C) query-row tile of the qkv slab
    # kv_ref: (1, Tp, 3C) full qkv slab for this batch element (resident over qi)
    # o_ref : (1, tq, C)  merged-head output tile (lane-dense store)
    qi = pl.program_id(1)
    tq = q_ref.shape[1]
    t_kv = kv_ref.shape[1]
    C = n_head * head_dim

    row = qi * tq + jax.lax.broadcasted_iota(jnp.int32, (tq, t_kv), 0)
    col = jax.lax.broadcasted_iota(jnp.int32, (tq, t_kv), 1)
    causal = col <= row

    outs = []
    for h in range(n_head):
        lo = h * head_dim
        hi = lo + head_dim
        q_h = q_ref[0, :, lo:hi] * scale                       # bf16, pre-scaled
        k_h = kv_ref[0, :, C + lo:C + hi]                      # bf16
        v_h = kv_ref[0, :, 2 * C + lo:2 * C + hi]              # bf16

        s = jax.lax.dot_general(q_h, k_h, (((1,), (1,)), ((), ())),
                                preferred_element_type=jnp.float32)  # (tq, Tp)
        s = jnp.where(causal, s, -1e30)
        m = jnp.max(s, axis=-1, keepdims=True)
        p = jnp.exp(s - m)
        denom = jnp.sum(p, axis=-1, keepdims=True)
        p = p * pl.reciprocal(denom, approx=True)
        outs.append(jnp.dot(p.astype(v_h.dtype), v_h,
                            preferred_element_type=jnp.float32))      # (tq, hd)

    o_ref[0] = jnp.concatenate(outs, axis=-1).astype(o_ref.dtype)


# ----------------------------------------------------------------------------
# Pallas wrappers
# ----------------------------------------------------------------------------

def layernorm(x, gamma, beta, tm=256):
    N, C = x.shape
    tm = _pick_tile(N, tm, 8)
    Np = _round_up(N, tm)
    xp = _pad2(x, Np, C)
    out = pl.pallas_call(
        _layernorm_kernel,
        out_shape=jax.ShapeDtypeStruct((Np, C), x.dtype),
        grid=(Np // tm,),
        in_specs=[pl.BlockSpec((tm, C), lambda i: (i, 0)),
                  pl.BlockSpec((1, C), lambda i: (0, 0)),
                  pl.BlockSpec((1, C), lambda i: (0, 0))],
        out_specs=pl.BlockSpec((tm, C), lambda i: (i, 0)),
        compiler_params=pltpu.CompilerParams(dimension_semantics=("parallel",)),
    )(xp, gamma.reshape(1, C).astype(jnp.float32),
      beta.reshape(1, C).astype(jnp.float32))
    return out[:N]


def linear(x, w, b=None, *, activation=None, residual=None, transpose_w=False,
           out_dtype=None, tm=256, tn=256, tk=512):
    """out = act(x @ W + b) [+ residual];  W is (K, Cout) or (Cout, K) if transpose_w."""
    N, K = x.shape
    if transpose_w:
        Cout, Kw = w.shape
    else:
        Kw, Cout = w.shape
    assert Kw == K
    out_dtype = out_dtype or x.dtype

    tm = _pick_tile(N, tm, 8)
    tn = _pick_tile(Cout, tn, 128)
    tk = _pick_tile(K, tk, 128)
    Np, Kp, Cp = _round_up(N, tm), _round_up(K, tk), _round_up(Cout, tn)
    nk = Kp // tk

    args = [_pad2(x, Np, Kp),
            _pad2(w, Cp, Kp) if transpose_w else _pad2(w, Kp, Cp)]
    in_specs = [
        pl.BlockSpec((tm, tk), lambda i, j, k: (i, k)),
        (pl.BlockSpec((tn, tk), lambda i, j, k: (j, k)) if transpose_w
         else pl.BlockSpec((tk, tn), lambda i, j, k: (k, j))),
    ]
    if b is not None:
        args.append(_pad2(b.reshape(1, Cout).astype(jnp.float32), 1, Cp))
        in_specs.append(pl.BlockSpec((1, tn), lambda i, j, k: (0, j)))
    if residual is not None:
        args.append(_pad2(residual, Np, Cp))
        in_specs.append(pl.BlockSpec((tm, tn), lambda i, j, k: (i, j)))

    kernel = functools.partial(
        _linear_kernel, nk=nk, activation=activation,
        has_bias=b is not None, has_residual=residual is not None,
        transpose_w=transpose_w)

    out = pl.pallas_call(
        kernel,
        out_shape=jax.ShapeDtypeStruct((Np, Cp), out_dtype),
        grid=(Np // tm, Cp // tn, nk),
        in_specs=in_specs,
        out_specs=pl.BlockSpec((tm, tn), lambda i, j, k: (i, j)),
        scratch_shapes=[pltpu.VMEM((tm, tn), jnp.float32)],
        compiler_params=pltpu.CompilerParams(
            dimension_semantics=("parallel", "parallel", "arbitrary")),
    )(*args)
    return out[:N, :Cout]


def causal_self_attention(qkv, n_head, tq=256):
    """qkv: (B, T, 3C) packed q|k|v.  Returns merged-head attention output (B, T, C)."""
    B, T, C3 = qkv.shape
    C = C3 // 3
    hd = C // n_head

    tq = _pick_tile(T, tq, 8)
    Tp = _round_up(T, tq)
    if Tp != T:
        # Padded key rows land strictly "in the future" -> masked by causality.
        qkv = jnp.pad(qkv, ((0, 0), (0, Tp - T), (0, 0)))
    nq = Tp // tq

    kernel = functools.partial(_attention_kernel, n_head=n_head, head_dim=hd,
                               scale=1.0 / math.sqrt(hd))
    out = pl.pallas_call(
        kernel,
        out_shape=jax.ShapeDtypeStruct((B, Tp, C), qkv.dtype),
        grid=(B, nq),
        in_specs=[pl.BlockSpec((1, tq, C3), lambda b, qi: (b, qi, 0)),   # q tile
                  pl.BlockSpec((1, Tp, C3), lambda b, qi: (b, 0, 0))],   # K/V slab (resident)
        out_specs=pl.BlockSpec((1, tq, C), lambda b, qi: (b, qi, 0)),
        compiler_params=pltpu.CompilerParams(
            dimension_semantics=("parallel", "arbitrary"),
            vmem_limit_bytes=48 * 1024 * 1024),
    )(qkv, qkv)
    return out[:, :T, :]


# ----------------------------------------------------------------------------
# Parameter init (matches GPT._init_weights statistics, deterministic)
# ----------------------------------------------------------------------------

def init_params(key, cfg):
    V, C, L, BS = cfg["vocab_size"], cfg["n_embd"], cfg["n_layer"], cfg["block_size"]
    std = 0.02
    proj_std = 0.02 * 2 * L ** (-0.5)      # NANOGPT_SCALE_INIT on mlp.c_proj
    keys = list(jax.random.split(key, 2 + 4 * L))
    ki = iter(keys)

    def nrm(k, shape, s):
        return (jax.random.normal(k, shape, jnp.float32) * s).astype(PARAM_DTYPE)

    params = {
        "wte": nrm(next(ki), (V, C), std),
        "wpe": nrm(next(ki), (BS, C), std),
        "ln_f_g": jnp.ones((C,), jnp.float32),
        "ln_f_b": jnp.zeros((C,), jnp.float32),
        "blocks": [],
    }
    for _ in range(L):
        blk = {
            "ln1_g": jnp.ones((C,), jnp.float32),
            "ln1_b": jnp.zeros((C,), jnp.float32),
            "ln2_g": jnp.ones((C,), jnp.float32),
            "ln2_b": jnp.zeros((C,), jnp.float32),
            # stored (in, out) so linear() does x @ W + b
            "attn_w": nrm(next(ki), (C, 3 * C), std),
            "attn_b": jnp.zeros((3 * C,), jnp.float32),
            "attn_proj_w": nrm(next(ki), (C, C), std),
            "attn_proj_b": jnp.zeros((C,), jnp.float32),
            "fc_w": nrm(next(ki), (C, 4 * C), std),
            "fc_b": jnp.zeros((4 * C,), jnp.float32),
            "mlp_proj_w": nrm(next(ki), (4 * C, C), proj_std),
            "mlp_proj_b": jnp.zeros((C,), jnp.float32),
        }
        params["blocks"].append(blk)
    return params


# ----------------------------------------------------------------------------
# GPT forward
# ----------------------------------------------------------------------------

def gpt_forward(params, idx, cfg):
    B, T = idx.shape
    C, H = cfg["n_embd"], cfg["n_head"]
    N = B * T

    tok_emb = jnp.take(params["wte"], idx, axis=0)        # (B, T, C) bf16
    pos_emb = params["wpe"][:T]                           # (T, C)    bf16
    x2 = (tok_emb + pos_emb[None, :, :]).astype(ACT_DTYPE).reshape(N, C)

    for blk in params["blocks"]:
        # --- attention sublayer (residual fused into the projection matmul) ---
        h = layernorm(x2, blk["ln1_g"], blk["ln1_b"])
        qkv = linear(h, blk["attn_w"], blk["attn_b"])                 # (N, 3C)
        y = causal_self_attention(qkv.reshape(B, T, 3 * C), H)        # (B, T, C)
        x2 = linear(y.reshape(N, C), blk["attn_proj_w"], blk["attn_proj_b"],
                    residual=x2)

        # --- MLP sublayer (GELU fused in c_fc, residual fused in c_proj) ---
        h = layernorm(x2, blk["ln2_g"], blk["ln2_b"])
        h = linear(h, blk["fc_w"], blk["fc_b"], activation="gelu_tanh")
        x2 = linear(h, blk["mlp_proj_w"], blk["mlp_proj_b"], residual=x2)

    # final layernorm + tied lm_head (no bias, wte used untransposed)
    h = layernorm(x2, params["ln_f_g"], params["ln_f_b"])
    logits = linear(h, params["wte"], None, transpose_w=True, out_dtype=jnp.float32)
    V = params["wte"].shape[0]
    return logits.reshape(B, T, V), None


# ----------------------------------------------------------------------------

if __name__ == "__main__":
    cfg = dict(block_size=16, vocab_size=128, n_layer=2, n_head=2, n_embd=32)
    B, T = 2, 8

    key = jax.random.PRNGKey(0)
    k_param, k_idx = jax.random.split(key)
    params = init_params(k_param, cfg)
    idx = jax.random.randint(k_idx, (B, T), 0, cfg["vocab_size"], dtype=jnp.int32)

    logits, loss = gpt_forward(params, idx, cfg)
    logits = jax.block_until_ready(logits)

    assert logits.shape == (B, T, cfg["vocab_size"])
    assert jnp.all(jnp.isfinite(logits))
    print("KERNEL_OK")
</pallas_src>

<mosaic_0001>
module attributes {stable_mosaic.version = 11 : i64} {
  func.func @_layernorm_kernel(%arg0: i32, %arg1: memref<16x32xbf16, #tpu.memory_space<vmem>>, %arg2: memref<1x32xf32, #tpu.memory_space<vmem>>, %arg3: memref<1x32xf32, #tpu.memory_space<vmem>>, %arg4: memref<16x32xbf16, #tpu.memory_space<vmem>>) attributes {dimension_semantics = [#tpu.dimension_semantics<parallel>], iteration_bounds = array<i64: 1>, scalar_prefetch = 0 : i64, scratch_operands = 0 : i64, tpu.core_type = #tpu.core_type<tc>, window_params = [{transform_indices = @transform_0, window_bounds = array<i64: 16, 32>}, {pipeline_mode = #tpu.pipeline_mode<synchronous>, transform_indices = @transform_1, window_bounds = array<i64: 1, 32>}, {pipeline_mode = #tpu.pipeline_mode<synchronous>, transform_indices = @transform_2, window_bounds = array<i64: 1, 32>}, {transform_indices = @transform_3, window_bounds = array<i64: 16, 32>}]} {
    %c0 = arith.constant 0 : index
    %c0_0 = arith.constant 0 : index
    %0 = vector.load %arg1[%c0, %c0_0] : memref<16x32xbf16, #tpu.memory_space<vmem>>, vector<16x32xbf16>
    %1 = arith.extf %0 : vector<16x32xbf16> to vector<16x32xf32>
    %cst = arith.constant dense<0.000000e+00> : vector<16xf32>
    %2 = vector.multi_reduction <add>, %1, %cst [1] : vector<16x32xf32> to vector<16xf32>
    %3 = vector.shape_cast %2 : vector<16xf32> to vector<16x1xf32>
    %cst_1 = arith.constant 3.200000e+01 : f32
    %4 = vector.broadcast %cst_1 : f32 to vector<16x1xf32>
    %5 = arith.divf %3, %4 : vector<16x1xf32>
    %6 = vector.broadcast %5 : vector<16x1xf32> to vector<16x32xf32>
    %7 = arith.subf %1, %6 : vector<16x32xf32>
    %8 = arith.mulf %7, %7 : vector<16x32xf32>
    %cst_2 = arith.constant dense<0.000000e+00> : vector<16xf32>
    %9 = vector.multi_reduction <add>, %8, %cst_2 [1] : vector<16x32xf32> to vector<16xf32>
    %10 = vector.shape_cast %9 : vector<16xf32> to vector<16x1xf32>
    %cst_3 = arith.constant 3.200000e+01 : f32
    %11 = vector.broadcast %cst_3 : f32 to vector<16x1xf32>
    %12 = arith.divf %10, %11 : vector<16x1xf32>
    %13 = vector.broadcast %5 : vector<16x1xf32> to vector<16x32xf32>
    %14 = arith.subf %1, %13 : vector<16x32xf32>
    %cst_4 = arith.constant 9.99999974E-6 : f32
    %15 = vector.broadcast %cst_4 : f32 to vector<16x1xf32>
    %16 = arith.addf %12, %15 : vector<16x1xf32>
    %17 = math.rsqrt %16 : vector<16x1xf32>
    %18 = vector.broadcast %17 : vector<16x1xf32> to vector<16x32xf32>
    %19 = arith.mulf %14, %18 : vector<16x32xf32>
    %c0_5 = arith.constant 0 : index
    %c0_6 = arith.constant 0 : index
    %20 = vector.load %arg2[%c0_5, %c0_6] : memref<1x32xf32, #tpu.memory_space<vmem>>, vector<1x32xf32>
    %21 = vector.broadcast %20 : vector<1x32xf32> to vector<16x32xf32>
    %22 = arith.mulf %19, %21 : vector<16x32xf32>
    %c0_7 = arith.constant 0 : index
    %c0_8 = arith.constant 0 : index
    %23 = vector.load %arg3[%c0_7, %c0_8] : memref<1x32xf32, #tpu.memory_space<vmem>>, vector<1x32xf32>
    %24 = vector.broadcast %23 : vector<1x32xf32> to vector<16x32xf32>
    %25 = arith.addf %22, %24 : vector<16x32xf32>
    %26 = arith.truncf %25 : vector<16x32xf32> to vector<16x32xbf16>
    %c0_9 = arith.constant 0 : index
    %c0_10 = arith.constant 0 : index
    %27 = vector.load %arg4[%c0_9, %c0_10] : memref<16x32xbf16, #tpu.memory_space<vmem>>, vector<16x32xbf16>
    tpu.vector_store %arg4[%c0_9, %c0_10], %26 {strides = array<i32>} : memref<16x32xbf16, #tpu.memory_space<vmem>>, vector<16x32xbf16>,
    return
  }
  func.func @transform_0(%arg0: i32) -> (i32, i32) {
    %c0_i32 = arith.constant 0 : i32
    %c0_i32_0 = arith.constant 0 : i32
    return %arg0, %c0_i32 : i32, i32
  }
  func.func @transform_1(%arg0: i32) -> (i32, i32) {
    %c0_i32 = arith.constant 0 : i32
    %c0_i32_0 = arith.constant 0 : i32
    %c0_i32_1 = arith.constant 0 : i32
    return %c0_i32, %c0_i32_0 : i32, i32
  }
  func.func @transform_2(%arg0: i32) -> (i32, i32) {
    %c0_i32 = arith.constant 0 : i32
    %c0_i32_0 = arith.constant 0 : i32
    %c0_i32_1 = arith.constant 0 : i32
    return %c0_i32, %c0_i32_0 : i32, i32
  }
  func.func @transform_3(%arg0: i32) -> (i32, i32) {
    %c0_i32 = arith.constant 0 : i32
    %c0_i32_0 = arith.constant 0 : i32
    return %arg0, %c0_i32 : i32, i32
  }
}

</mosaic_0001>

<bundles_post_ra>
// kernel: tpu_custom_call.1
= control target key start
LH: loop header
LB: loop body
LE: loop exit
PB: predicated region body
PF: predicated region fallthrough
CT: control target
= control target key end

     0   :  { %8 = vsyncpa [#allocation3], 0  ;;  %s237_s0 = inlined_call_operand.hbm [shape: bf16[16,32], index: 0, kind: input, shape index: {}]   ;;  %s238_s1 = inlined_call_operand.vmem [shape: f32[1,32], index: 1, kind: input, shape index: {}]   ;;  %s239_s2 = inlined_call_operand.vmem [shape: f32[1,32], index: 2, kind: input, shape index: {}]   ;;  %s240_s3 = inlined_call_operand.hbm [shape: bf16[16,32], index: 3, kind: output, shape index: {}]  }
   0x1   :  { %9 = vsyncpa [#allocation4], 0  ;;  %s173_s12 = smov [#allocation2]   ;;  %s125_s16 = scalar_lea.hbm %s237_s0, 128 }
   0x2   :  { %s15_s13 = sshll.u32 %s173_s12, 4  ;;  %p126_p0 = scmp.ne.s32.totalorder %s237_s0, %s125_s16  ;;  %s16_s13 = int_to_ptr.vmem [resolvable:$true] %s15_s13 }
   0x3   :  { %p129_p1 = scmp.lt.u32.totalorder %s125_s16, %s237_s0 }
   0x5   :  { %p131_p2 = pnand %p129_p1, %p126_p0 }
   0x7   :  { %134 = shalt.err (!%p131_p2)
}
   0x8   :  { %s135_s21 = scalar_lea.vmem %s16_s13, 128  ;;  %p140_p4 = scmp.lt.s32.totalorder %s16_s13, %s16_s13 }
   0x9   :  { %p136_p3 = scmp.ne.s32.totalorder %s16_s13, %s135_s21  ;;  %p141_p5 = scmp.lt.s32.totalorder %s135_s21, %s135_s21 }
   0xb   :  { %p142_p6 = por %p141_p5, %p140_p4 }
   0xd   :  { %p143_p7 = pnand %p142_p6, %p136_p3 }
   0xf   :  { %146 = shalt.err (!%p143_p7)
}
  0x10   :  { %s174_s22 = smov 64   ;;  %s175_s23 = smov 4  }
  0x11   :  { %21 = dma.hbm_to_vmem [thread:$0]  %s237_s0, 128, %s16_s13, [#allocation3], %s174_s22, %s174_s22, %s175_s23  }
  0x12   :  { %169 = dma.done.wait [#allocation3], 128  }
  0x13   :  { %170 = vsyncadd [#allocation3], 4294967168  ;;  %v114_v0 = vld [vmem:[#allocation2] sm:$0xff]   ;;  %vm33_vm0 = vcmask 261120   ;;  %vm87_vm1 = vcmask 257024   ;;  %s176_s29 = smov [#allocation5]  }
  0x14   :  { %v115_v1 = vunpack.c.l.bf16 %v114_v0  ;;  %v116_v2 = vunpack.c.h.bf16 %v114_v0  ;;  %v107_v22 = vld [vmem:[%s238_s1] ss:$0 sm:$0xff]  ;;  %s95_s30 = sshll.u32 %s176_s29, 4  ;;  %s96_s30 = int_to_ptr.vmem [resolvable:$true] %s95_s30 }
  0x15   :  { %v108_v24 = vld [vmem:[%s239_s2] ss:$0 sm:$0xff]  ;;  %s147_s1 = scalar_lea.vmem %s96_s30, 128  ;;  %p152_p9 = scmp.lt.s32.totalorder %s96_s30, %s96_s30 }
  0x16   :  { %v34_v3 = vsel %vm33_vm0, %v115_v1, 0.0  ;;  %v37_v4 = vsel %vm33_vm0, %v116_v2, 0.0  ;;  %p148_p8 = scmp.ne.s32.totalorder %s96_s30, %s147_s1  ;;  %p153_p10 = scmp.lt.s32.totalorder %s147_s1, %s147_s1 }
  0x17   :  { %35 = vadd.xlane.f32.xlu0 %v34_v3 }
  0x18   :  { %p154_p11 = por %p153_p10, %p152_p9 }
  0x1a   :  { %p155_p12 = pnand %p154_p11, %p148_p8 }
  0x1b   :  { %38 = vadd.xlane.f32.xlu0 %v37_v4 }
  0xa4   :  { %v36_v5 = vpop.xlane.xlu0 %35 }
  0xa5   :  { %v41_v6 = vmul.f32 0.03125, %v36_v5 }
  0xa7   :  { %v43_v7 = vsub.f32 %v115_v1, %v41_v6 }
  0xa8   :  { %v39_v8 = vpop.xlane.xlu0 %38 }
  0xa9   :  { %v42_v9 = vmul.f32 0.03125, %v39_v8  ;;  %v45_v10 = vmul.f32 %v43_v7, %v43_v7 }
  0xab   :  { %v44_v11 = vsub.f32 %v116_v2, %v42_v9  ;;  %v47_v12 = vsel %vm33_vm0, %v45_v10, 0.0 }
  0xac   :  { %48 = vadd.xlane.f32.xlu1 %v47_v12 }
  0xad   :  { %v46_v13 = vmul.f32 %v44_v11, %v44_v11 }
  0xaf   :  { %v50_v14 = vsel %vm33_vm0, %v46_v13, 0.0 }
  0xb0   :  { %51 = vadd.xlane.f32.xlu1 %v50_v14 }
 0x139   :  { %v49_v15 = vpop.xlane.xlu1 %48 }
 0x13a   :  { %v53_v16 = vmul.f32 0.03125, %v49_v15 }
 0x13c   :  { %v55_v17 = vadd.f32 1e-05, %v53_v16 }
 0x13d   :  { %v52_v18 = vpop.xlane.xlu1 %51 }
 0x13e   :  { %121 = vrsqrt.f32 %v55_v17  ;;  %v54_v19 = vmul.f32 0.03125, %v52_v18 }
 0x140   :  { %v56_v20 = vadd.f32 1e-05, %v54_v19 }
 0x142   :  { %123 = vrsqrt.f32 %v56_v20 }
 0x148   :  { %v122_v21 = vpop.eup %121 }
 0x149   :  { %v59_v23 = vmul.f32 %v122_v21, %v43_v7 }
 0x14b   :  { %v68_v25 = vmul.f32 %v107_v22, %v59_v23 }
 0x14c   :  { %v124_v26 = vpop.eup %123 }
 0x14d   :  { %v60_v27 = vmul.f32 %v124_v26, %v44_v11  ;;  %v77_v28 = vadd.f32 %v108_v24, %v68_v25 }
 0x14f   :  { %v69_v29 = vmul.f32 %v107_v22, %v60_v27  ;;  %v111_v30 = vpack.c.bf16 %v77_v28, %v77_v28 }
 0x151   :  { %v78_v31 = vadd.f32 %v108_v24, %v69_v29  ;;  %88 = vst.msk [vmem:[#allocation5] sm:$0xf] %vm87_vm1, %v111_v30 }
 0x153   :  { %v112_v32 = vpack.c.bf16 %v78_v31, %v78_v31 }
 0x155   :  { %89 = vst.msk [vmem:[#allocation5 + $0x4] sm:$0xf] %vm87_vm1, %v112_v32 }
 0x156   :  { %158 = shalt.err (!%p155_p12)
}
 0x157   :  { %s159_s5 = scalar_lea.hbm %s240_s3, 128 }
 0x158   :  { %p160_p13 = scmp.ne.s32.totalorder %s240_s3, %s159_s5  ;;  %p163_p0 = scmp.lt.u32.totalorder %s159_s5, %s240_s3 }
 0x15a   :  { %p165_p1 = pnand %p163_p0, %p160_p13 }
 0x15c   :  { %168 = shalt.err (!%p165_p1)
}
 0x15d   :  { %101 = dma.vmem_to_hbm [thread:$0]  %s96_s30, 128, %s240_s3, [#allocation4], %s174_s22, %s174_s22, %s175_s23  }
 0x15e   :  { %171 = dma.done.wait [#allocation4], 128  }
 0x15f   :  { %172 = vsyncadd [#allocation4], 4294967168 }
 0x160   :  { %105 = vsyncpa [#allocation3], 1 }
 0x161   :  { %106 = vsyncpa [#allocation4], 1 }

</bundles_post_ra>
